<compile_context>
chip_gen: v7x
topology: tpu7x:2x2x1
jax: 0.10.0
libtpu: 0.0.40
codegen_flags: <defaults>
</compile_context>

<pallas_src>
import functools

import jax
import jax.numpy as jnp
from jax.experimental import pallas as pl
from jax.experimental.pallas import tpu as pltpu

_LANE = 128
_MIB = 1024 * 1024


def _chip_vmem_bytes():
    try:
        return int(pltpu.get_tpu_info().vmem_capacity_bytes)
    except Exception:
        return 128 * _MIB


def _num_tensorcores():
    """Best-effort TensorCore count per chip (used only for auto-splitting)."""
    try:
        info = pltpu.get_tpu_info()
        for attr in ("num_cores", "num_tensorcores", "tensorcores_per_chip",
                     "cores_per_chip"):
            n = getattr(info, attr, None)
            if n:
                return int(n)
    except Exception:
        pass
    try:
        n = getattr(jax.devices()[0], "num_cores", None)
        if n:
            return int(n)
    except Exception:
        pass
    return 1


def _dice_sums_single_kernel(x_ref, y_ref, inter_out, denom_out):
    """Fast path: the whole flattened row fits in one tile (num_j == 1)."""
    x = x_ref[0].astype(jnp.float32)
    y = y_ref[0].astype(jnp.float32)
    inter_out[0] = jnp.sum(x * y, axis=-1, keepdims=True)
    denom_out[0] = jnp.sum(x + y, axis=-1, keepdims=True)


def _dice_sums_kernel(x_ref, y_ref, inter_out, denom_out, inter_acc, denom_acc,
                      *, row_len, tm, fold, n_splits, tiles_per_split,
                      mask_start):
    p = pl.program_id(0)
    j = pl.program_id(1)

    @pl.when(j == 0)
    def _():
        inter_acc[...] = jnp.zeros_like(inter_acc)
        denom_acc[...] = jnp.zeros_like(denom_acc)

    x = x_ref[0].astype(jnp.float32)
    y = y_ref[0].astype(jnp.float32)

    width = tm // fold

    def _fold(v):
        out = v[:, :width]
        for i in range(1, fold):
            out = out + v[:, i * width:(i + 1) * width]
        return out

    def _accumulate(masked):
        prod = x * y
        ssum = x + y
        if masked:
            # Global tile index along the flattened axis (unclamped): tiles at
            # or past the last real tile mask out lanes >= row_len.  Padded /
            # phantom block contents are multiplied but jnp.where selects the
            # 0.0 constant, so NaN/Inf in unspecified memory cannot propagate.
            g = (p % n_splits) * tiles_per_split + j
            lane = jax.lax.broadcasted_iota(jnp.int32, prod.shape, 1)
            valid = (g * tm + lane) < row_len
            prod = jnp.where(valid, prod, 0.0)
            ssum = jnp.where(valid, ssum, 0.0)
        inter_acc[...] += _fold(prod)
        denom_acc[...] += _fold(ssum)

    needs_mask = mask_start < tiles_per_split * n_splits
    if needs_mask:
        g = (p % n_splits) * tiles_per_split + j
        is_masked = g >= mask_start

        @pl.when(jnp.logical_not(is_masked))
        def _():
            _accumulate(False)

        @pl.when(is_masked)
        def _():
            _accumulate(True)
    else:
        _accumulate(False)

    @pl.when(j == pl.num_programs(1) - 1)
    def _():
        inter_out[0] = jnp.sum(inter_acc[...], axis=-1, keepdims=True)
        denom_out[0] = jnp.sum(denom_acc[...], axis=-1, keepdims=True)


def per_channel_dice_pallas(x, y, epsilon=1e-5, *, tile=None, block_bytes=None,
                            splits=None):
    """x, y: (N, C, *spatial); returns (C,) per-channel dice (float32)."""
    assert x.shape == y.shape, "'input' and 'target' must have the same shape"
    assert x.ndim >= 3, "expected (N, C, *spatial)"
    N, C = x.shape[0], x.shape[1]
    hw = 1
    for d in x.shape[2:]:
        hw *= d

    in_bytes = jnp.dtype(x.dtype).itemsize

    # Pack small channel counts onto full sublanes.  Sub-32-bit dtypes pack
    # along sublanes, so target 8 * (4 / itemsize) rows (16 for bf16, 32 for
    # int8/fp8).  (N, C, HW) -> (N, C*k, HW//k): contiguous reshape, no HBM
    # traffic.
    sublane_target = 8 * max(1, 4 // max(1, in_bytes))
    k = 1
    while C * k < sublane_target and hw % (2 * k) == 0:
        k *= 2
    ck = C * k
    row_len = hw // k

    x3 = x.reshape(N, ck, row_len)
    y3 = y.reshape(N, ck, row_len)

    # Per-chip VMEM budget: big blocks on 128-MiB-VMEM chips (v5e/v6e),
    # conservative blocks + limit on 64-MiB-VMEM chips (v7x) so input
    # double-buffering survives.
    vmem_cap = _chip_vmem_bytes()
    if block_bytes is None:
        block_bytes = 8 * _MIB if vmem_cap >= 96 * _MIB else 4 * _MIB
    vmem_limit = min(100 * _MIB, max(32 * _MIB, vmem_cap - 8 * _MIB))

    # Tile the flattened axis so each input block is ~block_bytes (lane dim a
    # multiple of 128), or take the whole row if it already fits.
    if tile is None:
        tm = max(_LANE, (block_bytes // max(1, ck * in_bytes)) // _LANE * _LANE)
    else:
        tm = max(_LANE, (int(tile) // _LANE) * _LANE)

    if tm >= row_len:
        tm = row_len            # full lane dim: no (8,128) constraint, no mask
        num_j = 1
    else:
        num_j = pl.cdiv(row_len, tm)

    # ---- fast path: single tile per (n) -> no scratch, no phases ----
    if num_j == 1:
        inter_raw, denom_raw = pl.pallas_call(
            _dice_sums_single_kernel,
            out_shape=(
                jax.ShapeDtypeStruct((N, ck, 1), jnp.float32),
                jax.ShapeDtypeStruct((N, ck, 1), jnp.float32),
            ),
            grid_spec=pltpu.PrefetchScalarGridSpec(
                num_scalar_prefetch=0,
                grid=(N,),
                in_specs=[
                    pl.BlockSpec((1, ck, row_len), lambda n: (n, 0, 0)),
                    pl.BlockSpec((1, ck, row_len), lambda n: (n, 0, 0)),
                ],
                out_specs=[
                    pl.BlockSpec((1, ck, 1), lambda n: (n, 0, 0)),
                    pl.BlockSpec((1, ck, 1), lambda n: (n, 0, 0)),
                ],
            ),
            compiler_params=pltpu.CompilerParams(
                dimension_semantics=("parallel",),
                vmem_limit_bytes=vmem_limit,
            ),
        )(x3, y3)
        inter = inter_raw.reshape(-1, C, k).sum(axis=(0, 2))
        denom = denom_raw.reshape(-1, C, k).sum(axis=(0, 2))
        return (2.0 * inter + epsilon) / (denom + epsilon)

    # ---- general path: multi-tile streaming reduction ----
    # Split the reduction axis across TensorCores when the batch alone cannot
    # feed them (v7x has 2 TCs/chip); each split owns its own output row so the
    # combine in the epilogue is race-free.
    if splits is None:
        n_cores = _num_tensorcores()
        n_splits = min(n_cores, num_j) if N < n_cores else 1
    else:
        n_splits = max(1, min(int(splits), num_j))
    tiles_per_split = pl.cdiv(num_j, n_splits)

    # First tile index that needs lane masking (ragged last real tile and any
    # phantom tiles introduced by an uneven split).
    mask_start = num_j - 1 if (row_len % tm) != 0 else num_j

    # Fold factor for the accumulators (lane slices at 128-lane boundaries).
    if tm % (4 * _LANE) == 0:
        fold = 4
    elif tm % (2 * _LANE) == 0:
        fold = 2
    else:
        fold = 1

    def _in_map(p, j):
        n = p // n_splits
        s = p % n_splits
        g = jnp.minimum(s * tiles_per_split + j, num_j - 1)  # stay in-bounds
        return (n, 0, g)

    kernel = functools.partial(
        _dice_sums_kernel, row_len=row_len, tm=tm, fold=fold,
        n_splits=n_splits, tiles_per_split=tiles_per_split,
        mask_start=mask_start)

    inter_raw, denom_raw = pl.pallas_call(
        kernel,
        out_shape=(
            jax.ShapeDtypeStruct((N * n_splits, ck, 1), jnp.float32),
            jax.ShapeDtypeStruct((N * n_splits, ck, 1), jnp.float32),
        ),
        grid_spec=pltpu.PrefetchScalarGridSpec(
            num_scalar_prefetch=0,
            grid=(N * n_splits, tiles_per_split),
            in_specs=[
                pl.BlockSpec((1, ck, tm), _in_map),
                pl.BlockSpec((1, ck, tm), _in_map),
            ],
            out_specs=[
                pl.BlockSpec((1, ck, 1), lambda p, j: (p, 0, 0)),
                pl.BlockSpec((1, ck, 1), lambda p, j: (p, 0, 0)),
            ],
            scratch_shapes=[
                pltpu.VMEM((ck, tm // fold), jnp.float32),
                pltpu.VMEM((ck, tm // fold), jnp.float32),
            ],
        ),
        compiler_params=pltpu.CompilerParams(
            dimension_semantics=("parallel", "arbitrary"),
            vmem_limit_bytes=vmem_limit,
        ),
    )(x3, y3)

    # Tiny epilogue in plain JAX: combine sub-rows + splits + batch, epsilon.
    inter = inter_raw.reshape(-1, C, k).sum(axis=(0, 2))
    denom = denom_raw.reshape(-1, C, k).sum(axis=(0, 2))
    return (2.0 * inter + epsilon) / (denom + epsilon)


def dice_coef(x, y, epsilon=1e-5, return_score_per_channel=False):
    per_channel = per_channel_dice_pallas(x, y, epsilon=epsilon)
    if return_score_per_channel:
        return per_channel
    return jnp.mean(per_channel)


def _dice_ref(x, y, epsilon=1e-5, per_channel=False):
    """Plain-JAX reference matching the PyTorch module's math."""
    C = x.shape[1]
    perm = (1, 0) + tuple(range(2, x.ndim))
    xf = jnp.transpose(x, perm).reshape(C, -1).astype(jnp.float32)
    yf = jnp.transpose(y, perm).reshape(C, -1).astype(jnp.float32)
    inter = jnp.sum(xf * yf, axis=-1)
    denom = jnp.sum(xf + yf, axis=-1)
    d = (2.0 * inter + epsilon) / (denom + epsilon)
    return d if per_channel else jnp.mean(d)


if __name__ == "__main__":
    key = jax.random.PRNGKey(0)
    k1, k2 = jax.random.split(key)

    # Test 1: small NCHW, mean dice (module default forward) -> fast path
    # (single tile per n, no scratch accumulators).
    x = jax.random.uniform(k1, (2, 4, 16, 16), dtype=jnp.float32)
    y = (jax.random.uniform(k2, (2, 4, 16, 16)) > 0.5).astype(jnp.float32)
    score = dice_coef(x, y)
    jax.block_until_ready(score)
    ref = _dice_ref(x, y)
    assert jnp.allclose(score, ref, rtol=1e-5, atol=1e-5), (score, ref)

    # Test 2: per-channel path, forced small tile + forced 2-way reduction
    # split to exercise multi-tile accumulation, the split combine, and the
    # hoisted ragged-tail lane mask (480 = 3*128 + 96).
    k3, k4 = jax.random.split(k1)
    x2 = jax.random.uniform(k3, (1, 8, 24, 20), dtype=jnp.float32)
    y2 = (jax.random.uniform(k4, (1, 8, 24, 20)) > 0.5).astype(jnp.float32)
    pc = per_channel_dice_pallas(x2, y2, tile=128, splits=2)
    jax.block_until_ready(pc)
    pc_ref = _dice_ref(x2, y2, per_channel=True)
    assert jnp.allclose(pc, pc_ref, rtol=1e-5, atol=1e-5), (pc, pc_ref)

    # Test 3: forced 512-lane tiles to exercise the folded-accumulator path
    # (fold=4) with an exact (non-ragged) multi-tile reduction.
    k5, k6 = jax.random.split(k2)
    x3 = jax.random.uniform(k5, (1, 2, 64, 64), dtype=jnp.float32)
    y3 = (jax.random.uniform(k6, (1, 2, 64, 64)) > 0.5).astype(jnp.float32)
    pc3 = per_channel_dice_pallas(x3, y3, tile=512)
    jax.block_until_ready(pc3)
    pc3_ref = _dice_ref(x3, y3, per_channel=True)
    assert jnp.allclose(pc3, pc3_ref, rtol=1e-5, atol=1e-5), (pc3, pc3_ref)

    print("KERNEL_OK")
</pallas_src>

<mosaic_0001>
module attributes {stable_mosaic.version = 11 : i64} {
  func.func @_dice_sums_single_kernel(%arg0: i32, %arg1: memref<1x8x128xf32, #tpu.memory_space<vmem>>, %arg2: memref<1x8x128xf32, #tpu.memory_space<vmem>>, %arg3: memref<1x8x1xf32, #tpu.memory_space<vmem>>, %arg4: memref<1x8x1xf32, #tpu.memory_space<vmem>>) attributes {dimension_semantics = [#tpu.dimension_semantics<parallel>], iteration_bounds = array<i64: 2>, scalar_prefetch = 0 : i64, scratch_operands = 0 : i64, tpu.core_type = #tpu.core_type<tc>, window_params = [{transform_indices = @transform_0, window_bounds = array<i64: 1, 8, 128>}, {transform_indices = @transform_1, window_bounds = array<i64: 1, 8, 128>}, {transform_indices = @transform_2, window_bounds = array<i64: 1, 8, 1>}, {transform_indices = @transform_3, window_bounds = array<i64: 1, 8, 1>}]} {
    %c0 = arith.constant 0 : index
    %c0_0 = arith.constant 0 : index
    %c0_1 = arith.constant 0 : index
    %0 = vector.load %arg1[%c0, %c0_0, %c0_1] : memref<1x8x128xf32, #tpu.memory_space<vmem>>, vector<1x8x128xf32>
    %1 = vector.shape_cast %0 : vector<1x8x128xf32> to vector<8x128xf32>
    %c0_2 = arith.constant 0 : index
    %c0_3 = arith.constant 0 : index
    %c0_4 = arith.constant 0 : index
    %2 = vector.load %arg2[%c0_2, %c0_3, %c0_4] : memref<1x8x128xf32, #tpu.memory_space<vmem>>, vector<1x8x128xf32>
    %3 = vector.shape_cast %2 : vector<1x8x128xf32> to vector<8x128xf32>
    %4 = arith.mulf %1, %3 : vector<8x128xf32>
    %cst = arith.constant dense<0.000000e+00> : vector<8xf32>
    %5 = vector.multi_reduction <add>, %4, %cst [1] : vector<8x128xf32> to vector<8xf32>
    %6 = vector.shape_cast %5 : vector<8xf32> to vector<8x1xf32>
    %c0_5 = arith.constant 0 : index
    %c0_6 = arith.constant 0 : index
    %c0_7 = arith.constant 0 : index
    %7 = vector.load %arg3[%c0_5, %c0_6, %c0_7] : memref<1x8x1xf32, #tpu.memory_space<vmem>>, vector<1x8x1xf32>
    %8 = vector.shape_cast %7 : vector<1x8x1xf32> to vector<8x1xf32>
    %9 = vector.shape_cast %6 : vector<8x1xf32> to vector<1x8x1xf32>
    tpu.vector_store %arg3[%c0_5, %c0_6, %c0_7], %9 {strides = array<i32>} : memref<1x8x1xf32, #tpu.memory_space<vmem>>, vector<1x8x1xf32>,
    %10 = arith.addf %1, %3 : vector<8x128xf32>
    %cst_8 = arith.constant dense<0.000000e+00> : vector<8xf32>
    %11 = vector.multi_reduction <add>, %10, %cst_8 [1] : vector<8x128xf32> to vector<8xf32>
    %12 = vector.shape_cast %11 : vector<8xf32> to vector<8x1xf32>
    %c0_9 = arith.constant 0 : index
    %c0_10 = arith.constant 0 : index
    %c0_11 = arith.constant 0 : index
    %13 = vector.load %arg4[%c0_9, %c0_10, %c0_11] : memref<1x8x1xf32, #tpu.memory_space<vmem>>, vector<1x8x1xf32>
    %14 = vector.shape_cast %13 : vector<1x8x1xf32> to vector<8x1xf32>
    %15 = vector.shape_cast %12 : vector<8x1xf32> to vector<1x8x1xf32>
    tpu.vector_store %arg4[%c0_9, %c0_10, %c0_11], %15 {strides = array<i32>} : memref<1x8x1xf32, #tpu.memory_space<vmem>>, vector<1x8x1xf32>,
    return
  }
  func.func @transform_0(%arg0: i32) -> (i32, i32, i32) {
    %c0_i32 = arith.constant 0 : i32
    %c0_i32_0 = arith.constant 0 : i32
    %c0_i32_1 = arith.constant 0 : i32
    return %arg0, %c0_i32, %c0_i32_0 : i32, i32, i32
  }
  func.func @transform_1(%arg0: i32) -> (i32, i32, i32) {
    %c0_i32 = arith.constant 0 : i32
    %c0_i32_0 = arith.constant 0 : i32
    %c0_i32_1 = arith.constant 0 : i32
    return %arg0, %c0_i32, %c0_i32_0 : i32, i32, i32
  }
  func.func @transform_2(%arg0: i32) -> (i32, i32, i32) {
    %c0_i32 = arith.constant 0 : i32
    %c0_i32_0 = arith.constant 0 : i32
    %c0_i32_1 = arith.constant 0 : i32
    return %arg0, %c0_i32, %c0_i32_0 : i32, i32, i32
  }
  func.func @transform_3(%arg0: i32) -> (i32, i32, i32) {
    %c0_i32 = arith.constant 0 : i32
    %c0_i32_0 = arith.constant 0 : i32
    %c0_i32_1 = arith.constant 0 : i32
    return %arg0, %c0_i32, %c0_i32_0 : i32, i32, i32
  }
}

</mosaic_0001>

<bundles_post_ra>
// kernel: tpu_custom_call.1
= control target key start
LH: loop header
LB: loop body
LE: loop exit
PB: predicated region body
PF: predicated region fallthrough
CT: control target
= control target key end

     0   :  { %9 = vsyncpa [#allocation3], 0  ;;  %s921_s0 = inlined_call_operand.hbm [shape: f32[2,8,128], index: 0, kind: input, shape index: {}]   ;;  %s922_s1 = inlined_call_operand.hbm [shape: f32[2,8,128], index: 1, kind: input, shape index: {}]   ;;  %s923_s2 = inlined_call_operand.hbm [shape: f32[2,8,1], index: 2, kind: output, shape index: {0}]   ;;  %s924_s3 = inlined_call_operand.hbm [shape: f32[2,8,1], index: 3, kind: output, shape index: {1}]  }
   0x1   :  { %11 = vsyncpa [#allocation3 + $0x1], 0 }
   0x2   :  { %12 = vsyncpa [#allocation6], 0 }
   0x3   :  { %14 = vsyncpa [#allocation6 + $0x1], 0 }
   0x4   :  { %15 = vsyncpa [#allocation4], 0 }
   0x5   :  { %17 = vsyncpa [#allocation4 + $0x1], 0 }
   0x6   :  { %18 = vsyncpa [#allocation9], 0 }
   0x7   :  { %20 = vsyncpa [#allocation9 + $0x1], 0  ;;  %s664_s12 = smov 0   ;;  %s666_s13 = smov 0  }
   0x8   :  { %s668_s14 = smov 0   ;;  %s670_s15 = smov 0  }
   0x9 LB: > { %s685_s16 = sadd.s32 4294967295, %s638_s15   ;;  %s402_s17 = sadd.s32 4294967294, %s638_s15   ;;  %s638_s15 = sphi %s670_s15, %s943_s15   ;;  %s634_s14 = sphi %s668_s14, %s942_s14   ;;  %s630_s13 = sphi %s666_s13, %s941_s13   ;;  %s626_s12 = sphi %s664_s12, %s940_s12  }
   0xa   : > { %s689_s18 = sadd.s32 1, %s638_s15   ;;  %s33_s19 = sadd.s32 1, %s634_s14 }
   0xb   : > { %s30_s20 = ssub.s32 %s638_s15, %s689_s18  ;;  %p40_p0 = scmp.ne.s32.totalorder %s634_s14, %s630_s13 }
   0xc   : > { %p31_p1 = scmp.eq.s32.totalorder %s30_s20, 0  ;;  %p41_p2 = scmp.eq.s32.totalorder %s638_s15, 0 }
   0xd   : > { %p46_p3 = scmp.ne.s32.totalorder %s630_s13, %s626_s12  ;;  %p47_p4 = scmp.eq.s32.totalorder %s685_s16, 0 }
   0xe   : > { %s701_s21 = scalar_select %p31_p1, %s634_s14, %s33_s19  }
   0xf   : > { %p703_p5 = por %p41_p2, %p40_p0  ;;  %p707_p6 = por %p47_p4, %p46_p3 }
  0x10   : > { %p96_p7 = scmp.eq.s32.totalorder %s685_s16, 1  ;;  %p102_p8 = scmp.eq.s32.totalorder %s402_s17, 1 }
  0x11   : > { %s928_s23 = scalar_select %p707_p6, 1, 0 }
  0x12   : > { %p442_p10 = scmp.lt.s32.totalorder %s638_s15, 2  ;;  %p714_p11 = por %p96_p7, %p40_p0 }
  0x13   : > { %p718_p12 = por %p102_p8, %p46_p3  ;;  %s723_s26 = sand.u32 1, %s634_s14  }
  0x14   : > { %s929_s24 = scalar_select %p714_p11, 1, 0 }
  0x15   : > { %s930_s25 = scalar_select %p718_p12, 1, 0 }
  0x16   : > { %s406_s27 = sshll.u32 %s638_s15, 7  ;;  %s405_s28 = sshll.u32 %s723_s26, 3 }
  0x17   : > { %s732_s4 = scalar_lea.hbm %s921_s0, %s406_s27  ;;  %s152_s5 = scalar_lea.vmem [#allocation2], %s405_s28 }
  0x18   : > { %s159_s6 = sshll.u32 %s152_s5, 4  ;;  %p738_p13 = pnand %p442_p10, %p703_p5  ;;  %s742_s6 = int_to_ptr.vmem [resolvable:$true] %s159_s6 }
  0x19   : > { %s149_s8 = scalar_lea.sflag [#allocation3], %s723_s26  ;;  %s476_s9 = scalar_lea.hbm %s732_s4, 128 }
  0x1a   : > { %p477_p2 = scmp.ne.s32.totalorder %s732_s4, %s476_s9  ;;  %p478_p3 = pneg %p738_p13 }
  0x1b   : > { %s481_s17 = scalar_lea.hbm %s921_s0, 256  ;;  %p482_p5 = scmp.lt.u32.totalorder %s732_s4, %s921_s0 }
  0x1c   : > { %p479_p4 = pnand %p478_p3, %p477_p2  ;;  %p483_p8 = scmp.lt.u32.totalorder %s481_s17, %s476_s9 }
  0x1d   : > { %p485_p9 = scmp.lt.u32.totalorder %s476_s9, %s732_s4 }
  0x1e   : > { %p480_p7 = pneg %p479_p4  ;;  %p484_p10 = por %p483_p8, %p482_p5 }
  0x20   : > { %p486_p0 = por %p485_p9, %p484_p10 }
  0x22   : > { %p487_p1 = pnand %p486_p0, %p480_p7 }
  0x24   : > { %490 = shalt.err (!%p487_p1)
}
  0x25   : > { %s491_s22 = scalar_lea.vmem %s742_s6, 128  ;;  %s640_s29 = smov [#allocation2]  }
  0x26   : > { %p492_p2 = scmp.ne.s32.totalorder %s742_s6, %s491_s22  ;;  %s496_s30 = sshll.u32 %s640_s29, 4  ;;  %s497_s30 = int_to_ptr.vmem [resolvable:$false] %s496_s30 }
  0x27   : > { %s498_s5 = scalar_lea.vmem %s497_s30, 256  ;;  %p499_p11 = scmp.lt.s32.totalorder %s742_s6, %s497_s30 }
  0x28   : > { %p494_p4 = pnand %p492_p2, %p478_p3  ;;  %p500_p5 = scmp.lt.s32.totalorder %s498_s5, %s491_s22 }
  0x2a   : > { %p495_p12 = pneg %p494_p4  ;;  %p501_p8 = por %p500_p5, %p499_p11 }
  0x2c   : > { %p502_p9 = pnand %p501_p8, %p495_p12 }
  0x2e   : > { %505 = shalt.err (!%p502_p9)
}
  0x2f   : > { %431 = dma.hbm_to_vmem [thread:$0]  (!%p738_p13), %s732_s4, 128, %s742_s6, %s149_s8  }
  0x30   : > { %p932_p0 = scmp.lt.s32.totalorder %s638_s15, 3  ;;  %p933_p1 = scmp.ge.s32.totalorder %s638_s15, 1 }
  0x31   : > { %s785_s17 = scalar_lea.hbm %s922_s1, %s406_s27  ;;  %s170_s19 = scalar_lea.vmem [#allocation5], %s405_s28 }
  0x32   : > { %p776_p7 = pnand %p933_p1, %p932_p0  ;;  %s177_s20 = sshll.u32 %s170_s19, 4  ;;  %s178_s20 = int_to_ptr.vmem [resolvable:$true] %s177_s20 }
  0x33   : > { %s167_s4 = scalar_lea.sflag [#allocation6], %s723_s26  ;;  %s506_s6 = scalar_lea.hbm %s785_s17, 128 }
  0x34   : > { %s934_s9 = scalar_select %p776_p7, 1, 0 }
  0x35   : > { %p507_p11 = scmp.ne.s32.totalorder %s785_s17, %s506_s6  ;;  %s511_s27 = scalar_lea.hbm %s922_s1, 256 }
  0x36   : > { %p512_p2 = scmp.lt.u32.totalorder %s785_s17, %s922_s1  ;;  %p513_p4 = scmp.lt.u32.totalorder %s511_s27, %s506_s6 }
  0x37   : > { %p509_p12 = pnand %p507_p11, %p478_p3  ;;  %p515_p8 = scmp.lt.u32.totalorder %s506_s6, %s785_s17 }
  0x38   : > { %p514_p5 = por %p513_p4, %p512_p2 }
  0x39   : > { %p510_p10 = pneg %p509_p12 }
  0x3a   : > { %p516_p9 = por %p515_p8, %p514_p5 }
  0x3c   : > { %p517_p0 = pnand %p516_p9, %p510_p10 }
  0x3e   : > { %520 = shalt.err (!%p517_p0)
}
  0x3f   : > { %s521_s26 = scalar_lea.vmem %s178_s20, 128  ;;  %s641_s28 = smov [#allocation5]  }
  0x40   : > { %p522_p1 = scmp.ne.s32.totalorder %s178_s20, %s521_s26  ;;  %s526_s5 = sshll.u32 %s641_s28, 4  ;;  %s527_s5 = int_to_ptr.vmem [resolvable:$false] %s526_s5 }
  0x41   : > { %s528_s10 = scalar_lea.vmem %s527_s5, 256  ;;  %p529_p6 = scmp.lt.s32.totalorder %s178_s20, %s527_s5 }
  0x42   : > { %p524_p11 = pnand %p522_p1, %p478_p3  ;;  %p530_p7 = scmp.lt.s32.totalorder %s528_s10, %s521_s26 }
  0x44   : > { %p525_p12 = pneg %p524_p11  ;;  %p531_p2 = por %p530_p7, %p529_p6 }
  0x46   : > { %p532_p4 = pnand %p531_p2, %p525_p12 }
  0x48   : > { %535 = shalt.err (!%p532_p4)
}
  0x49   : > { %434 = dma.hbm_to_vmem [thread:$0]  (!%p738_p13), %s785_s17, 128, %s178_s20, %s167_s4  }
  0x4a   : > { %p935_p10 = scmp.ne.s32.totalorder %s934_s9, 0 }
  0x4b   : > { %s812_s11 = sand.u32 (!%p935_p10), 1, %s630_s13   ;;  %p936_p6 = scmp.ne.s32.totalorder (!%p935_p10), %s928_s23, 0 }
  0x4c   : > { %186 = sbr.rel (%p935_p10) target bundleno = 268 (0x10c), region = 28  ;;  %s815_s19 = sshll.u32 (!%p935_p10), %s812_s11, 3 }
  0x4d   : > { %s189_s6 = scalar_lea.sflag (!%p935_p10), [#allocation3], %s812_s11  ;;  %s192_s8 = scalar_lea.vmem (!%p935_p10), [#allocation2], %s815_s19 }
  0x53   : > { %609 = dma.done.wait (%p936_p6), %s189_s6, 128  }
  0x54   : > { %611 = vsyncadd (%p936_p6), %s189_s6, 4294967168  ;;  %s198_s7 = scalar_lea.sflag [#allocation6], %s812_s11  ;;  %s201_s9 = scalar_lea.vmem [#allocation5], %s815_s19 }
  0x55   : > { %613 = dma.done.wait (%p936_p6), %s198_s7, 128  }
  0x56   : > { %615 = vsyncadd (%p936_p6), %s198_s7, 4294967168  ;;  %v234_v0 = vld [vmem:[%s192_s8] sm:$0xff]  ;;  %v235_v1 = vld [vmem:[%s201_s9] sm:$0xff]  ;;  %s416_s17 = sshll.u32 %s685_s16, 7  ;;  %s226_s20 = scalar_lea.vmem [#allocation7], %s815_s19  ;;  %vm239_vm0 = vcmask 7168  }
  0x57   : > { %v236_v2 = vmul.f32 %v235_v1, %v234_v0  ;;  %v241_v3 = vadd.f32 %v235_v1, %v234_v0  ;;  %s264_s4 = sshll.u32 %s226_s20, 4  ;;  %s836_s27 = scalar_lea.hbm %s923_s2, %s416_s17  ;;  %s838_s4 = int_to_ptr.vmem [resolvable:$true] %s264_s4 }
  0x58   : > { %s233_s29 = scalar_lea.vmem [#allocation8], %s815_s19  ;;  %s246_s26 = scalar_lea.sflag [#allocation4], %s812_s11 }
  0x59   : > { %237 = vadd.xlane.f32.xlu0 %v236_v2  ;;  %s843_s30 = sshll.u32 %s233_s29, 4  ;;  %s536_s28 = scalar_lea.vmem %s838_s4, 128  ;;  %s876_s30 = int_to_ptr.vmem [resolvable:$true] %s843_s30 }
  0x5a   : > { %p537_p13 = scmp.ne.s32.totalorder %s838_s4, %s536_s28  ;;  %p937_p3 = scmp.ne.s32.totalorder %s929_s24, 0 }
  0x5b   : > { %s642_s5 = smov [#allocation7]  }
  0x5c   : > { %p538_p7 = pnand %p537_p13, %p937_p3  ;;  %s540_s10 = sshll.u32 %s642_s5, 4  ;;  %s541_s10 = int_to_ptr.vmem [resolvable:$false] %s540_s10 }
  0x5d   : > { %242 = vadd.xlane.f32.xlu0 %v241_v3  ;;  %s542_s6 = scalar_lea.vmem %s541_s10, 256  ;;  %p543_p8 = scmp.lt.s32.totalorder %s838_s4, %s541_s10 }
  0x5e   : > { %p539_p5 = pneg %p538_p7  ;;  %p544_p9 = scmp.lt.s32.totalorder %s542_s6, %s536_s28 }
  0x60   : > { %p545_p0 = por %p544_p9, %p543_p8 }
  0x62   : > { %p546_p1 = pnand %p545_p0, %p539_p5 }
  0xe6   : > { %v238_v4 = vpop.xlane.xlu0 %237 }
  0xe7   : > { %240 = vst.msk [vmem:[%s226_s20] sm:$0xff] %vm239_vm0, %v238_v4 }
  0xe8   : > { %549 = shalt.err (!%p546_p1)
}
  0xe9   : > { %s550_s8 = scalar_lea.hbm %s836_s27, 128  ;;  %s554_s20 = scalar_lea.hbm %s923_s2, 256 }
  0xea   : > { %p551_p11 = scmp.ne.s32.totalorder %s836_s27, %s550_s8  ;;  %p555_p4 = scmp.lt.u32.totalorder %s836_s27, %s923_s2 }
  0xeb   : > { %p556_p10 = scmp.lt.u32.totalorder %s554_s20, %s550_s8  ;;  %p558_p13 = scmp.lt.u32.totalorder %s550_s8, %s836_s27 }
  0xec   : > { %p552_p12 = pnand %p551_p11, %p937_p3 }
  0xed   : > { %p557_p6 = por %p556_p10, %p555_p4 }
  0xee   : > { %p553_p2 = pneg %p552_p12 }
  0xef   : > { %p559_p7 = por %p558_p13, %p557_p6 }
  0xf1   : > { %p560_p5 = pnand %p559_p7, %p553_p2 }
  0xf3   : > { %563 = shalt.err (!%p560_p5)
}
  0xf4   : > { %424 = dma.vmem_to_hbm [thread:$0]  (%p937_p3), %s838_s4, 128, %s836_s27, %s246_s26   ;;  %v243_v5 = vpop.xlane.xlu0 %242 }
  0xf5   : > { %s873_s10 = scalar_lea.hbm %s924_s3, %s416_s17  ;;  %244 = vst.msk [vmem:[%s233_s29] sm:$0xff] %vm239_vm0, %v243_v5  ;;  %s251_s6 = scalar_lea.sflag [#allocation9], %s812_s11 }
  0xf6   : > { %s564_s8 = scalar_lea.vmem %s876_s30, 128  ;;  %s643_s16 = smov [#allocation8]  }
  0xf7   : > { %p565_p8 = scmp.ne.s32.totalorder %s876_s30, %s564_s8  ;;  %s568_s4 = sshll.u32 %s643_s16, 4  ;;  %s569_s4 = int_to_ptr.vmem [resolvable:$false] %s568_s4 }
  0xf8   : > { %s570_s17 = scalar_lea.vmem %s569_s4, 256  ;;  %p571_p1 = scmp.lt.s32.totalorder %s876_s30, %s569_s4 }
  0xf9   : > { %p566_p9 = pnand %p565_p8, %p937_p3  ;;  %p572_p11 = scmp.lt.s32.totalorder %s570_s17, %s564_s8 }
  0xfb   : > { %p567_p0 = pneg %p566_p9  ;;  %p573_p12 = por %p572_p11, %p571_p1 }
  0xfd   : > { %p574_p2 = pnand %p573_p12, %p567_p0 }
  0xff   : > { %577 = shalt.err (!%p574_p2)
}
 0x100   : > { %s578_s11 = scalar_lea.hbm %s873_s10, 128  ;;  %s582_s29 = scalar_lea.hbm %s924_s3, 256 }
 0x101   : > { %p579_p4 = scmp.ne.s32.totalorder %s873_s10, %s578_s11  ;;  %p583_p13 = scmp.lt.u32.totalorder %s873_s10, %s924_s3 }
 0x102   : > { %p584_p7 = scmp.lt.u32.totalorder %s582_s29, %s578_s11  ;;  %p586_p8 = scmp.lt.u32.totalorder %s578_s11, %s873_s10 }
 0x103   : > { %p580_p10 = pnand %p579_p4, %p937_p3 }
 0x104   : > { %p585_p5 = por %p584_p7, %p583_p13 }
 0x105   : > { %p581_p6 = pneg %p580_p10 }
 0x106   : > { %p587_p9 = por %p586_p8, %p585_p5 }
 0x108   : > { %p588_p0 = pnand %p587_p9, %p581_p6 }
 0x10a   : > { %591 = shalt.err (!%p588_p0)
}
 0x10b   : > { %425 = dma.vmem_to_hbm [thread:$0]  (%p937_p3), %s876_s30, 128, %s873_s10, %s251_s6  }
 0x10c PF: > { %s289_s9 = sand.u32 1, %s626_s12   ;;  %p938_p1 = scmp.ne.s32.totalorder %s930_s25, 0 }
 0x10d   : > { %p939_p11 = scmp.ge.s32.totalorder %s638_s15, 2  ;;  %s290_s20 = scalar_lea.sflag [#allocation4], %s289_s9 }
 0x10f   : > { %p436_p12 = pnand %p939_p11, %p938_p1 }
 0x111   : > { %617 = dma.done.wait (!%p436_p12), %s290_s20, 128  }
 0x112   : > { %619 = vsyncadd (!%p436_p12), %s290_s20, 4294967168  ;;  %s299_s23 = scalar_lea.sflag [#allocation9], %s289_s9 }
 0x113   : > { %621 = dma.done.wait (!%p436_p12), %s299_s23, 128  }
 0x114   : > { %623 = vsyncadd (!%p436_p12), %s299_s23, 4294967168  ;;  %p23_p3 = scmp.ge.s32.totalorder %s689_s18, 4   ;;  %s940_s12 = smov %s630_s13 }
 0x115   : > { %s941_s13 = smov %s634_s14  ;;  %s942_s14 = smov %s701_s21 }
 0x116   : > { %s943_s15 = smov %s689_s18  ;;  %25 = sbr.rel (!%p23_p3) target bundleno = 9 (0x9), region = 103 }
 0x11d   :  { %304 = vsyncpa [#allocation3], 1 }
 0x11e   :  { %306 = vsyncpa [#allocation3 + $0x1], 1 }
 0x11f   :  { %307 = vsyncpa [#allocation6], 1 }
 0x120   :  { %309 = vsyncpa [#allocation6 + $0x1], 1 }
 0x121   :  { %310 = vsyncpa [#allocation4], 1 }
 0x122   :  { %312 = vsyncpa [#allocation4 + $0x1], 1 }
 0x123   :  { %313 = vsyncpa [#allocation9], 1 }
 0x124   :  { %315 = vsyncpa [#allocation9 + $0x1], 1 }

</bundles_post_ra>
